<compile_context>
chip_gen: v7x
topology: tpu7x:2x2x1
jax: 0.10.0
libtpu: 0.0.40
codegen_flags: <defaults>
</compile_context>

<pallas_src>
import functools
import math

import jax
import jax.numpy as jnp
from jax.experimental import pallas as pl
from jax.experimental.pallas import tpu as pltpu

LN_EPS = 1e-5  # PyTorch nn.LayerNorm default


def _round_up(v, m):
    return (v + m - 1) // m * m


# --------------------------------------------------------------------------- #
# Kernel bodies
# --------------------------------------------------------------------------- #
def _layernorm_relu(acc_f32, params_f32, f_true, eps):
    """bias + LayerNorm(F) + ReLU on an f32 (tm, Fp) tile.

    Padded feature lanes of `acc_f32` / `params_f32` are exactly zero, so the
    one-pass statistics are exact when divided by the *true* F and padded output
    lanes come out as 0 (they are sliced off / harmless).
    """
    bias = params_f32[0:1, :]
    gamma = params_f32[1:2, :]
    beta = params_f32[2:3, :]

    y = acc_f32 + bias
    inv_f = 1.0 / float(f_true)
    mean = jnp.sum(y, axis=-1, keepdims=True) * inv_f
    ex2 = jnp.sum(y * y, axis=-1, keepdims=True) * inv_f
    var = ex2 - mean * mean
    inv_std = jax.lax.rsqrt(var + eps)              # EUP: off the VALU critical path
    out = (y - mean) * inv_std * gamma + beta
    return jnp.maximum(out, 0.0)


def _mlp_kernel_resident(x_ref, w_ref, p_ref, o_ref, *, f_true, eps, mxu_dtype):
    # x_ref: (tm, Hk) row tile; w_ref: (Hk, Fp) fully-resident weight;
    # p_ref: (3, Fp) stacked bias/gamma/beta; o_ref: (tm, Fp) lane-dense output.
    xv = x_ref[...]
    wv = w_ref[...]
    if mxu_dtype is not None:                       # optional bf16 MXU path for f32 models
        xv = xv.astype(mxu_dtype)
        wv = wv.astype(mxu_dtype)
    acc = jnp.dot(xv, wv, preferred_element_type=jnp.float32)
    p = p_ref[...].astype(jnp.float32)
    o_ref[...] = _layernorm_relu(acc, p, f_true, eps).astype(o_ref.dtype)


def _mlp_kernel_streamk(x_ref, w_ref, p_ref, o_ref, acc_ref, *, f_true, eps, mxu_dtype):
    # Streams the hidden (K) axis through the grid with an f32 VMEM accumulator.
    k = pl.program_id(1)

    @pl.when(k == 0)
    def _():
        acc_ref[...] = jnp.zeros_like(acc_ref)

    xv = x_ref[...]
    wv = w_ref[...]
    if mxu_dtype is not None:
        xv = xv.astype(mxu_dtype)
        wv = wv.astype(mxu_dtype)
    acc_ref[...] += jnp.dot(xv, wv, preferred_element_type=jnp.float32)

    @pl.when(k == pl.num_programs(1) - 1)
    def _():
        p = p_ref[...].astype(jnp.float32)
        o_ref[...] = _layernorm_relu(acc_ref[...], p, f_true, eps).astype(o_ref.dtype)


# --------------------------------------------------------------------------- #
# Hardware / schedule selection
# --------------------------------------------------------------------------- #
def _hw_config():
    """Per-generation knobs: VMEM budget, physical VMEM, MXU N-width, #TensorCores."""
    try:
        kind = jax.devices()[0].device_kind.lower()
    except Exception:
        kind = ""
    is_v7 = ("v7" in kind) or ("7x" in kind)
    wide_mxu = is_v7 or ("v6" in kind)

    vmem_cap = None
    try:
        info = pltpu.get_tpu_info()
        for attr in ("vmem_capacity_bytes", "vmem_bytes", "vmem_size_bytes"):
            v = getattr(info, attr, None)
            if v:
                vmem_cap = int(v)
                break
    except Exception:
        vmem_cap = None
    if not vmem_cap:
        vmem_cap = (64 << 20) if is_v7 else (128 << 20)

    # ~80% of physical, capped at 100 MiB: ~100 MiB on v5e/v6e, ~51 MiB on v7x.
    budget = max(32 << 20, min(100 << 20, (vmem_cap * 4) // 5))
    mxu_n = 256 if wide_mxu else 128
    num_tc = 2 if is_v7 else 1
    return budget, vmem_cap, mxu_n, num_tc


def _select_schedule(rows, H, Fp, x_item, w_item, out_item, budget, sub_mult,
                     row_tile, num_tc):
    """Returns (tm, Hk, tk, k_steps, need_bytes)."""
    Hp = _round_up(H, 128)
    params_bytes = 2 * 8 * Fp * 4          # (3,Fp) f32, sublane-padded, double-buffered
    headroom = 2 << 20

    def shrink(t):
        nt = max(sub_mult, _round_up(t // 2, sub_mult))
        return nt if nt < t else None

    def single_need(tm_):
        return (2 * tm_ * Hp * x_item + 2 * Hp * Fp * w_item + params_bytes
                + 2 * tm_ * Fp * out_item + headroom)

    def stream_need(tm_, tk_):
        return (2 * tm_ * tk_ * x_item + 2 * tk_ * Fp * w_item + params_bytes
                + 2 * tm_ * Fp * out_item + tm_ * Fp * 4 + headroom)

    tm0 = max(sub_mult, min(row_tile, _round_up(rows, sub_mult)))

    chosen = None
    # 1) Weight-resident, single K step: weight DMA'd once for the whole grid.
    tm_try = tm0
    while chosen is None:
        if single_need(tm_try) <= budget:
            chosen = (tm_try, Hp, Hp, 1, single_need(tm_try))
            break
        nt = shrink(tm_try)
        if nt is None or nt < 128:          # don't crumb rows below 128 just for residency
            break
        tm_try = nt

    # 2) Fall back to K streaming with an f32 VMEM accumulator.
    if chosen is None:
        Hs = _round_up(H, 512) if H > 512 else Hp   # keep tk = 512 when streaming big K
        tm_try = tm0
        while chosen is None:
            for tk_c in (512, 256, 128):
                if tk_c > Hs or Hs % tk_c:
                    continue
                need = stream_need(tm_try, tk_c)
                if need <= budget:
                    chosen = (tm_try, Hs, tk_c, Hs // tk_c, need)
                    break
            if chosen is None:
                nt = shrink(tm_try)
                if nt is None:
                    # Last resort: smallest tiles; LayerNorm forbids tiling the F axis.
                    chosen = (tm_try, Hs, 128, Hs // 128, stream_need(tm_try, 128))
                    break
                tm_try = nt

    tm, Hk, tk, k_steps, need = chosen

    # 3) Guarantee >= num_tc row tiles so megacore (v7x) uses both TensorCores.
    if num_tc > 1:
        while (_round_up(rows, tm) // tm) < num_tc:
            nt = shrink(tm)
            if nt is None:
                break
            tm = nt

    return tm, Hk, tk, k_steps, need


# --------------------------------------------------------------------------- #
# Public wrapper
# --------------------------------------------------------------------------- #
def mlp_forward(x, w, b, gamma, beta, *, row_tile=512, mxu_dtype=None):
    """x: (..., H) -> (..., F); fused Linear + LayerNorm + ReLU.

    w is stored (H, F) (i.e. y = x @ w + b).  Set mxu_dtype=jnp.bfloat16 to trade
    a little precision for MXU throughput on f32 models (off by default).
    """
    orig_shape = x.shape
    H = orig_shape[-1]
    F = w.shape[1]
    rows = 1
    for d in orig_shape[:-1]:
        rows *= d
    x2d = x.reshape(rows, H)

    budget, vmem_cap, mxu_n, num_tc = _hw_config()

    x_item = jnp.dtype(x.dtype).itemsize
    w_item = jnp.dtype(w.dtype).itemsize
    sub_mult = {4: 8, 2: 16, 1: 32}.get(x_item, 8)   # sublane packing multiple

    # Feature (lane) axis: lane-dense stores; 256-align on 256-wide-MXU chips.
    Fp = _round_up(F, 256) if (mxu_n == 256 and F > 128) else _round_up(F, 128)

    tm, Hk, tk, k_steps, need = _select_schedule(
        rows, H, Fp, x_item, w_item, x_item, budget, sub_mult, row_tile, num_tc)

    rows_p = _round_up(rows, tm)
    n_row_tiles = rows_p // tm

    # Zero-pad only when the geometry actually requires it (padding contributes
    # exact zeros to both the matmul and the LayerNorm sums).
    if rows_p != rows or Hk != H:
        x2d = jnp.pad(x2d, ((0, rows_p - rows), (0, Hk - H)))
    w_p = jnp.pad(w, ((0, Hk - H), (0, Fp - F))) if (Hk != H or Fp != F) else w

    def _pad_f(v):
        v = v.astype(jnp.float32).reshape(-1)
        return jnp.pad(v, (0, Fp - F)) if Fp != F else v

    params = jnp.stack([_pad_f(b), _pad_f(gamma), _pad_f(beta)], axis=0)   # (3, Fp) f32

    vmem_limit = int(min(max(need, 32 << 20), vmem_cap - (4 << 20)))

    if k_steps == 1:
        kernel = functools.partial(_mlp_kernel_resident, f_true=F, eps=LN_EPS,
                                   mxu_dtype=mxu_dtype)
        grid_spec = pltpu.PrefetchScalarGridSpec(
            num_scalar_prefetch=0,
            grid=(n_row_tiles,),
            in_specs=[
                pl.BlockSpec((tm, Hk), lambda i: (i, 0)),     # x row tile
                pl.BlockSpec((Hk, Fp), lambda i: (0, 0)),     # fully-resident weight
                pl.BlockSpec((3, Fp), lambda i: (0, 0)),      # bias / gamma / beta
            ],
            out_specs=pl.BlockSpec((tm, Fp), lambda i: (i, 0)),
        )
        dim_sem = ("parallel",)
    else:
        kernel = functools.partial(_mlp_kernel_streamk, f_true=F, eps=LN_EPS,
                                   mxu_dtype=mxu_dtype)
        grid_spec = pltpu.PrefetchScalarGridSpec(
            num_scalar_prefetch=0,
            grid=(n_row_tiles, k_steps),
            in_specs=[
                pl.BlockSpec((tm, tk), lambda i, k: (i, k)),  # x K chunk
                pl.BlockSpec((tk, Fp), lambda i, k: (k, 0)),  # weight K chunk
                pl.BlockSpec((3, Fp), lambda i, k: (0, 0)),   # bias / gamma / beta
            ],
            out_specs=pl.BlockSpec((tm, Fp), lambda i, k: (i, 0)),
            scratch_shapes=[pltpu.VMEM((tm, Fp), jnp.float32)],
        )
        dim_sem = ("parallel", "arbitrary")

    out2d = pl.pallas_call(
        kernel,
        out_shape=jax.ShapeDtypeStruct((rows_p, Fp), x.dtype),
        grid_spec=grid_spec,
        compiler_params=pltpu.CompilerParams(
            dimension_semantics=dim_sem,
            vmem_limit_bytes=vmem_limit,
        ),
    )(x2d, w_p, params)

    # TODO(synk): the feature (N) axis is never tiled because the fused LayerNorm
    # reduces over the full output row; K streaming covers the large-weight case.
    if rows_p != rows or Fp != F:
        out2d = out2d[:rows, :F]
    return out2d.reshape(orig_shape[:-1] + (F,))


# --------------------------------------------------------------------------- #
# Params / reference / smoke test
# --------------------------------------------------------------------------- #
def init_mlp_params(key, hidden_size, out_features=None):
    """Deterministic init mirroring nn.Linear / nn.LayerNorm defaults."""
    if out_features is None:
        out_features = hidden_size
    k_w, k_b = jax.random.split(key)
    bound = 1.0 / math.sqrt(hidden_size)
    # torch stores (out, in); we keep (in, out) so the kernel matmul is x @ W.
    w = jax.random.uniform(k_w, (hidden_size, out_features),
                           minval=-bound, maxval=bound, dtype=jnp.float32)
    b = jax.random.uniform(k_b, (out_features,),
                           minval=-bound, maxval=bound, dtype=jnp.float32)
    gamma = jnp.ones((out_features,), jnp.float32)
    beta = jnp.zeros((out_features,), jnp.float32)
    return w, b, gamma, beta


def _reference(x, w, b, gamma, beta):
    y = x @ w + b
    mean = y.mean(axis=-1, keepdims=True)
    var = ((y - mean) ** 2).mean(axis=-1, keepdims=True)
    y = (y - mean) / jnp.sqrt(var + LN_EPS)
    y = y * gamma + beta
    return jnp.maximum(y, 0.0)


if __name__ == "__main__":
    key = jax.random.PRNGKey(0)
    k_x, k_p = jax.random.split(key)

    batch, seq, hidden = 2, 8, 32
    out_features = 32

    x = jax.random.normal(k_x, (batch, seq, hidden), dtype=jnp.float32)
    w, b, gamma, beta = init_mlp_params(k_p, hidden, out_features)

    out = mlp_forward(x, w, b, gamma, beta)
    out = jax.block_until_ready(out)

    ref = _reference(x, w, b, gamma, beta)
    assert out.shape == (batch, seq, out_features)
    assert jnp.allclose(out, ref, atol=1e-5, rtol=1e-5), "mismatch vs reference"

    print("KERNEL_OK")
</pallas_src>

<mosaic_0001>
module attributes {stable_mosaic.version = 11 : i64} {
  func.func @_mlp_kernel_resident(%arg0: i32, %arg1: memref<16x128xf32, #tpu.memory_space<vmem>>, %arg2: memref<128x128xf32, #tpu.memory_space<vmem>>, %arg3: memref<3x128xf32, #tpu.memory_space<vmem>>, %arg4: memref<16x128xf32, #tpu.memory_space<vmem>>) attributes {dimension_semantics = [#tpu.dimension_semantics<parallel>], iteration_bounds = array<i64: 1>, scalar_prefetch = 0 : i64, scratch_operands = 0 : i64, tpu.core_type = #tpu.core_type<tc>, window_params = [{transform_indices = @transform_0, window_bounds = array<i64: 16, 128>}, {pipeline_mode = #tpu.pipeline_mode<synchronous>, transform_indices = @transform_1, window_bounds = array<i64: 128, 128>}, {pipeline_mode = #tpu.pipeline_mode<synchronous>, transform_indices = @transform_2, window_bounds = array<i64: 3, 128>}, {transform_indices = @transform_3, window_bounds = array<i64: 16, 128>}]} {
    %c0 = arith.constant 0 : index
    %c0_0 = arith.constant 0 : index
    %0 = vector.load %arg1[%c0, %c0_0] : memref<16x128xf32, #tpu.memory_space<vmem>>, vector<16x128xf32>
    %c0_1 = arith.constant 0 : index
    %c0_2 = arith.constant 0 : index
    %1 = vector.load %arg2[%c0_1, %c0_2] : memref<128x128xf32, #tpu.memory_space<vmem>>, vector<128x128xf32>
    %cst = arith.constant dense<0.000000e+00> : vector<16x128xf32>
    %2 = tpu.matmul %0, %1, %cst {dimension_numbers = #tpu.dot_dimension_numbers<[1], [0], [0], [1], [0, 0, 1, 1], [], []>} : vector<16x128xf32>, vector<128x128xf32>, vector<16x128xf32> -> vector<16x128xf32>
    %c0_3 = arith.constant 0 : index
    %c0_4 = arith.constant 0 : index
    %3 = vector.load %arg3[%c0_3, %c0_4] : memref<3x128xf32, #tpu.memory_space<vmem>>, vector<3x128xf32>
    %4 = vector.extract_strided_slice %3 {offsets = [0, 0], sizes = [1, 128], strides = [1, 1]} : vector<3x128xf32> to vector<1x128xf32>
    %5 = vector.extract_strided_slice %3 {offsets = [1, 0], sizes = [1, 128], strides = [1, 1]} : vector<3x128xf32> to vector<1x128xf32>
    %6 = vector.extract_strided_slice %3 {offsets = [2, 0], sizes = [1, 128], strides = [1, 1]} : vector<3x128xf32> to vector<1x128xf32>
    %7 = vector.broadcast %4 : vector<1x128xf32> to vector<16x128xf32>
    %8 = arith.addf %2, %7 : vector<16x128xf32>
    %cst_5 = arith.constant dense<0.000000e+00> : vector<16xf32>
    %9 = vector.multi_reduction <add>, %8, %cst_5 [1] : vector<16x128xf32> to vector<16xf32>
    %10 = vector.shape_cast %9 : vector<16xf32> to vector<16x1xf32>
    %cst_6 = arith.constant 3.125000e-02 : f32
    %11 = vector.broadcast %cst_6 : f32 to vector<16x1xf32>
    %12 = arith.mulf %10, %11 : vector<16x1xf32>
    %13 = arith.mulf %8, %8 : vector<16x128xf32>
    %cst_7 = arith.constant dense<0.000000e+00> : vector<16xf32>
    %14 = vector.multi_reduction <add>, %13, %cst_7 [1] : vector<16x128xf32> to vector<16xf32>
    %15 = vector.shape_cast %14 : vector<16xf32> to vector<16x1xf32>
    %cst_8 = arith.constant 3.125000e-02 : f32
    %16 = vector.broadcast %cst_8 : f32 to vector<16x1xf32>
    %17 = arith.mulf %15, %16 : vector<16x1xf32>
    %18 = arith.mulf %12, %12 : vector<16x1xf32>
    %19 = arith.subf %17, %18 : vector<16x1xf32>
    %cst_9 = arith.constant 9.99999974E-6 : f32
    %20 = vector.broadcast %cst_9 : f32 to vector<16x1xf32>
    %21 = arith.addf %19, %20 : vector<16x1xf32>
    %22 = math.rsqrt %21 : vector<16x1xf32>
    %23 = vector.broadcast %12 : vector<16x1xf32> to vector<16x128xf32>
    %24 = arith.subf %8, %23 : vector<16x128xf32>
    %25 = vector.broadcast %22 : vector<16x1xf32> to vector<16x128xf32>
    %26 = arith.mulf %24, %25 : vector<16x128xf32>
    %27 = vector.broadcast %5 : vector<1x128xf32> to vector<16x128xf32>
    %28 = arith.mulf %26, %27 : vector<16x128xf32>
    %29 = vector.broadcast %6 : vector<1x128xf32> to vector<16x128xf32>
    %30 = arith.addf %28, %29 : vector<16x128xf32>
    %cst_10 = arith.constant 0.000000e+00 : f32
    %31 = vector.broadcast %cst_10 : f32 to vector<16x128xf32>
    %32 = arith.maximumf %30, %31 : vector<16x128xf32>
    %c0_11 = arith.constant 0 : index
    %c0_12 = arith.constant 0 : index
    %33 = vector.load %arg4[%c0_11, %c0_12] : memref<16x128xf32, #tpu.memory_space<vmem>>, vector<16x128xf32>
    tpu.vector_store %arg4[%c0_11, %c0_12], %32 {strides = array<i32>} : memref<16x128xf32, #tpu.memory_space<vmem>>, vector<16x128xf32>,
    return
  }
  func.func @transform_0(%arg0: i32) -> (i32, i32) {
    %c0_i32 = arith.constant 0 : i32
    %c0_i32_0 = arith.constant 0 : i32
    return %arg0, %c0_i32 : i32, i32
  }
  func.func @transform_1(%arg0: i32) -> (i32, i32) {
    %c0_i32 = arith.constant 0 : i32
    %c0_i32_0 = arith.constant 0 : i32
    %c0_i32_1 = arith.constant 0 : i32
    return %c0_i32, %c0_i32_0 : i32, i32
  }
  func.func @transform_2(%arg0: i32) -> (i32, i32) {
    %c0_i32 = arith.constant 0 : i32
    %c0_i32_0 = arith.constant 0 : i32
    %c0_i32_1 = arith.constant 0 : i32
    return %c0_i32, %c0_i32_0 : i32, i32
  }
  func.func @transform_3(%arg0: i32) -> (i32, i32) {
    %c0_i32 = arith.constant 0 : i32
    %c0_i32_0 = arith.constant 0 : i32
    return %arg0, %c0_i32 : i32, i32
  }
}

</mosaic_0001>

<bundles_post_ra>
// kernel: tpu_custom_call.1
= control target key start
LH: loop header
LB: loop body
LE: loop exit
PB: predicated region body
PF: predicated region fallthrough
CT: control target
= control target key end

     0   :  { %8 = vsyncpa [#allocation3], 0  ;;  %s440_s0 = inlined_call_operand.hbm [shape: f32[16,128], index: 0, kind: input, shape index: {}]   ;;  %s441_s1 = inlined_call_operand.hbm [shape: f32[128,128], index: 1, kind: input, shape index: {}]   ;;  %s442_s2 = inlined_call_operand.vmem [shape: f32[3,128], index: 2, kind: input, shape index: {}]   ;;  %s443_s3 = inlined_call_operand.hbm [shape: f32[16,128], index: 3, kind: output, shape index: {}]  }
   0x1   :  { %9 = vsyncpa [#allocation6], 0 }
   0x2   :  { %10 = vsyncpa [#allocation4], 0  ;;  %s367_s12 = smov [#allocation2]   ;;  %s295_s16 = scalar_lea.hbm %s440_s0, 256 }
   0x3   :  { %s16_s13 = sshll.u32 %s367_s12, 4  ;;  %p296_p0 = scmp.ne.s32.totalorder %s440_s0, %s295_s16  ;;  %s17_s13 = int_to_ptr.vmem [resolvable:$true] %s16_s13 }
   0x4   :  { %p299_p1 = scmp.lt.u32.totalorder %s295_s16, %s440_s0 }
   0x6   :  { %p301_p2 = pnand %p299_p1, %p296_p0 }
   0x8   :  { %304 = shalt.err (!%p301_p2)
}
   0x9   :  { %s305_s21 = scalar_lea.vmem %s17_s13, 256  ;;  %p310_p4 = scmp.lt.s32.totalorder %s17_s13, %s17_s13 }
   0xa   :  { %p306_p3 = scmp.ne.s32.totalorder %s17_s13, %s305_s21  ;;  %p311_p5 = scmp.lt.s32.totalorder %s305_s21, %s305_s21 }
   0xc   :  { %p312_p6 = por %p311_p5, %p310_p4 }
   0xe   :  { %p313_p7 = pnand %p312_p6, %p306_p3 }
  0x10   :  { %316 = shalt.err (!%p313_p7)
}
  0x11   :  { %s368_s22 = smov 128   ;;  %s369_s23 = smov 8  }
  0x12   :  { %22 = dma.hbm_to_vmem [thread:$0]  %s440_s0, 256, %s17_s13, [#allocation3], %s368_s22, %s368_s22, %s369_s23  }
  0x13   :  { %s370_s26 = smov [#allocation5]   ;;  %s317_s30 = scalar_lea.hbm %s441_s1, 2048 }
  0x14   :  { %s28_s27 = sshll.u32 %s370_s26, 4  ;;  %p318_p8 = scmp.ne.s32.totalorder %s441_s1, %s317_s30  ;;  %s29_s27 = int_to_ptr.vmem [resolvable:$true] %s28_s27 }
  0x15   :  { %p321_p9 = scmp.lt.u32.totalorder %s317_s30, %s441_s1 }
  0x17   :  { %p323_p10 = pnand %p321_p9, %p318_p8 }
  0x19   :  { %326 = shalt.err (!%p323_p10)
}
  0x1a   :  { %s327_s8 = scalar_lea.vmem %s29_s27, 2048  ;;  %p332_p12 = scmp.lt.s32.totalorder %s29_s27, %s29_s27 }
  0x1b   :  { %p328_p11 = scmp.ne.s32.totalorder %s29_s27, %s327_s8  ;;  %p333_p13 = scmp.lt.s32.totalorder %s327_s8, %s327_s8 }
  0x1d   :  { %p334_p0 = por %p333_p13, %p332_p12 }
  0x1f   :  { %p335_p1 = pnand %p334_p0, %p328_p11 }
  0x21   :  { %338 = shalt.err (!%p335_p1)
}
  0x22   :  { %34 = dma.hbm_to_vmem [thread:$0]  %s441_s1, 2048, %s29_s27, [#allocation6], %s368_s22, %s368_s22, %s369_s23  }
  0x23   :  { %361 = dma.done.wait [#allocation3], 256  }
  0x24   :  { %362 = vsyncadd [#allocation3], 4294967040 }
  0x25   :  { %363 = dma.done.wait [#allocation6], 2048  }
  0x26   :  { %364 = vsyncadd [#allocation6], 4294965248  ;;  %v45_v0 = vld [vmem:[#allocation5] sm:$0xff]  ;;  %v46_v1 = vld [vmem:[#allocation5 + $0x8] sm:$0xff]  ;;  %v62_v26 = vlaneseq }
  0x27   :  { %v47_v2 = vld [vmem:[#allocation5 + $0x10] sm:$0xff]  ;;  %v254_v3 = vpack.c.bf16 %v46_v1, %v45_v0  ;;  %v48_v4 = vld [vmem:[#allocation5 + $0x18] sm:$0xff]  ;;  %v49_v6 = vld [vmem:[#allocation5 + $0x20] sm:$0xff] }
  0x28   :  { %v258_v5 = vpack.c.bf16 %v48_v4, %v47_v2  ;;  %v50_v7 = vld [vmem:[#allocation5 + $0x28] sm:$0xff]  ;;  %v43_v9 = vld [vmem:[#allocation2] sm:$0xff]  ;;  %v52_v11 = vld [vmem:[#allocation5 + $0x38] sm:$0xff]  ;;  %v63_v27 = vshrl.u32 %v62_v26, 7 }
  0x29   :  { %255 = vmatprep.subr.bf16.mxu0 %v254_v3  ;;  %v262_v8 = vpack.c.bf16 %v50_v7, %v49_v6  ;;  %v51_v10 = vld [vmem:[#allocation5 + $0x30] sm:$0xff]  ;;  %251 = vmatprep.mubr.f32.mxu0 %v43_v9  ;;  %v53_v13 = vld [vmem:[#allocation5 + $0x40] sm:$0xff]  ;;  %v54_v14 = vld [vmem:[#allocation5 + $0x48] sm:$0xff] }
  0x2a   :  { %257 = vmatpush3.bf16.msra.mxu0 %v254_v3  ;;  %v266_v12 = vpack.c.bf16 %v52_v11, %v51_v10  ;;  %v270_v15 = vpack.c.bf16 %v54_v14, %v53_v13  ;;  %v55_v16 = vld [vmem:[#allocation5 + $0x50] sm:$0xff]  ;;  %v56_v17 = vld [vmem:[#allocation5 + $0x58] sm:$0xff]  ;;  %v57_v19 = vld [vmem:[#allocation5 + $0x60] sm:$0xff]  ;;  %v64_v28 = vsub.s32 0, %v63_v27  ;;  %v169_v51 = vsub.s32 1, %v63_v27 }
  0x2b   :  { %259 = vmatprep.subr.bf16.mxu0 %v258_v5  ;;  %v274_v18 = vpack.c.bf16 %v56_v17, %v55_v16  ;;  %v58_v20 = vld [vmem:[#allocation5 + $0x68] sm:$0xff]  ;;  %v59_v22 = vld [vmem:[#allocation5 + $0x70] sm:$0xff]  ;;  %v60_v23 = vld [vmem:[#allocation5 + $0x78] sm:$0xff]  ;;  %v175_v52 = vsub.s32 2, %v63_v27 }
  0x2c   :  { %v278_v21 = vpack.c.bf16 %v58_v20, %v57_v19  ;;  %v282_v24 = vpack.c.bf16 %v60_v23, %v59_v22  ;;  %v44_v25 = vld [vmem:[#allocation2 + $0x8] sm:$0xff]  ;;  %v61_v29 = vld [vmem:[%s442_s2] sm:$0x7]  ;;  %s371_s2 = smov [#allocation7]  }
  0x2d   :  { %v65_v30 = vrot.slane %v61_v29, %v64_v28  ;;  %v170_v53 = vrot.slane %v61_v29, %v169_v51  ;;  %v176_v56 = vrot.slane %v61_v29, %v175_v52  ;;  %s188_s11 = sshll.u32 %s371_s2, 4  ;;  %s189_s11 = int_to_ptr.vmem [resolvable:$true] %s188_s11 }
  0x2e   :  { %261 = vmatpush3.bf16.msra.mxu0 %v258_v5  ;;  %s339_s12 = scalar_lea.vmem %s189_s11, 256  ;;  %p344_p3 = scmp.lt.s32.totalorder %s189_s11, %s189_s11 }
  0x2f   :  { %263 = vmatprep.subr.bf16.mxu0 %v262_v8  ;;  %p340_p2 = scmp.ne.s32.totalorder %s189_s11, %s339_s12  ;;  %p345_p4 = scmp.lt.s32.totalorder %s339_s12, %s339_s12 }
  0x31   :  { %p346_p5 = por %p345_p4, %p344_p3 }
  0x32   :  { %265 = vmatpush3.bf16.msra.mxu0 %v262_v8 }
  0x33   :  { %267 = vmatprep.subr.bf16.mxu0 %v266_v12  ;;  %p347_p6 = pnand %p346_p5, %p340_p2 }
  0x36   :  { %269 = vmatpush3.bf16.msra.mxu0 %v266_v12 }
  0x37   :  { %271 = vmatprep.subr.bf16.mxu0 %v270_v15 }
  0x3a   :  { %273 = vmatpush3.bf16.msra.mxu0 %v270_v15 }
  0x3b   :  { %275 = vmatprep.subr.bf16.mxu0 %v274_v18 }
  0x3e   :  { %277 = vmatpush3.bf16.msra.mxu0 %v274_v18 }
  0x3f   :  { %279 = vmatprep.subr.bf16.mxu0 %v278_v21 }
  0x42   :  { %281 = vmatpush3.bf16.msra.mxu0 %v278_v21 }
  0x43   :  { %283 = vmatprep.subr.bf16.mxu0 %v282_v24 }
  0x46   :  { %285 = vmatpush3.bf16.msra.mxu0 %v282_v24 }
  0x49   :  { %252 = vmatmul.mubr.f32.vlgmr.msra.gmra.mrb[0].mxu0 %v44_v25 }
 0x11c   :  { %v253_v31 = vpop.f32.mrb[0].mxu0 }
 0x11d   :  { %v132_v32 = vpop.f32.mrb[1].mxu0  ;;  %v138_v34 = vadd.f32 %v253_v31, %v65_v30 }
 0x11e   :  { %v133_v33 = vadd.f32 %v132_v32, %v65_v30 }
 0x11f   :  { %v148_v36 = vmul.f32 %v138_v34, %v138_v34 }
 0x120   :  { %141 = vadd.xlane.f32.xlu0 %v133_v33  ;;  %v147_v35 = vmul.f32 %v133_v33, %v133_v33 }
 0x122   :  { %149 = vadd.xlane.f32.xlu1 %v147_v35 }
 0x124   :  { %143 = vadd.xlane.f32.xlu0 %v138_v34 }
 0x126   :  { %151 = vadd.xlane.f32.xlu1 %v148_v36 }
 0x1ad   :  { %v142_v37 = vpop.xlane.xlu0 %141 }
 0x1ae   :  { %v145_v38 = vmul.f32 0.03125, %v142_v37 }
 0x1af   :  { %v150_v39 = vpop.xlane.xlu1 %149 }
 0x1b0   :  { %v155_v40 = vmul.f32 %v145_v38, %v145_v38  ;;  %v153_v41 = vmul.f32 0.03125, %v150_v39  ;;  %v163_v54 = vsub.f32 %v133_v33, %v145_v38 }
 0x1b1   :  { %v144_v42 = vpop.xlane.xlu0 %143 }
 0x1b2   :  { %v157_v43 = vsub.f32 %v153_v41, %v155_v40  ;;  %v146_v44 = vmul.f32 0.03125, %v144_v42 }
 0x1b3   :  { %v152_v45 = vpop.xlane.xlu1 %151 }
 0x1b4   :  { %v159_v46 = vadd.f32 1e-05, %v157_v43  ;;  %v156_v47 = vmul.f32 %v146_v44, %v146_v44  ;;  %v154_v48 = vmul.f32 0.03125, %v152_v45  ;;  %v164_v58 = vsub.f32 %v138_v34, %v146_v44 }
 0x1b6   :  { %291 = vrsqrt.f32 %v159_v46  ;;  %v158_v49 = vsub.f32 %v154_v48, %v156_v47 }
 0x1b8   :  { %v160_v50 = vadd.f32 1e-05, %v158_v49 }
 0x1ba   :  { %293 = vrsqrt.f32 %v160_v50 }
 0x1c0   :  { %v292_v55 = vpop.eup %291 }
 0x1c1   :  { %v165_v57 = vmul.f32 %v292_v55, %v163_v54 }
 0x1c3   :  { %v171_v59 = vmul.f32 %v170_v53, %v165_v57 }
 0x1c4   :  { %v294_v60 = vpop.eup %293 }
 0x1c5   :  { %v166_v61 = vmul.f32 %v294_v60, %v164_v58  ;;  %v177_v62 = vadd.f32 %v176_v56, %v171_v59 }
 0x1c7   :  { %v172_v63 = vmul.f32 %v170_v53, %v166_v61  ;;  %v179_v0 = vmax.f32 %v177_v62, 0.0 }
 0x1c9   :  { %v178_v1 = vadd.f32 %v176_v56, %v172_v63  ;;  %181 = vst [vmem:[#allocation7] sm:$0xff] %v179_v0 }
 0x1cb   :  { %v180_v2 = vmax.f32 %v178_v1, 0.0 }
 0x1cd   :  { %182 = vst [vmem:[#allocation7 + $0x8] sm:$0xff] %v180_v2 }
 0x1ce   :  { %350 = shalt.err (!%p347_p6)
}
 0x1cf   :  { %s351_s15 = scalar_lea.hbm %s443_s3, 256 }
 0x1d0   :  { %p352_p7 = scmp.ne.s32.totalorder %s443_s3, %s351_s15  ;;  %p355_p8 = scmp.lt.u32.totalorder %s351_s15, %s443_s3 }
 0x1d2   :  { %p357_p9 = pnand %p355_p8, %p352_p7 }
 0x1d4   :  { %360 = shalt.err (!%p357_p9)
}
 0x1d5   :  { %194 = dma.vmem_to_hbm [thread:$0]  %s189_s11, 256, %s443_s3, [#allocation4], %s368_s22, %s368_s22, %s369_s23  }
 0x1d6   :  { %365 = dma.done.wait [#allocation4], 256  }
 0x1d7   :  { %366 = vsyncadd [#allocation4], 4294967040 }
 0x1d8   :  { %198 = vsyncpa [#allocation3], 1 }
 0x1d9   :  { %199 = vsyncpa [#allocation6], 1 }
 0x1da   :  { %200 = vsyncpa [#allocation4], 1 }

</bundles_post_ra>
